<compile_context>
chip_gen: v5e
topology: v5e:2x2
jax: 0.10.0
libtpu: 0.0.40
codegen_flags: <defaults>
</compile_context>

<pallas_src>
import jax
import jax.numpy as jnp
from jax.experimental import pallas as pl
from jax.experimental.pallas import tpu as pltpu

INPUT_SIZE = 39
HIDDEN = 64
OUT_DIM = 2


def lstm_head_kernel(x_ref, wx_ref, wh_ref, b_ref, wo_ref, bo_ref, out_ref):
    """Full LSTM recurrence + final Linear, single program (no grid).

    x_ref  : (T*B, F)   VMEM  time-major rows; step t owns rows [t*B, (t+1)*B)
    wx_ref : (F, 4H)    VMEM  (g columns pre-scaled by 2)
    wh_ref : (H, 4H)    VMEM  (g columns pre-scaled by 2)
    b_ref  : (1, 4H)    VMEM  (b_ih + b_hh, g columns pre-scaled by 2)
    wo_ref : (H, OUT)   VMEM
    bo_ref : (1, OUT)   VMEM
    out_ref: (B, OUT)   VMEM
    """
    TB, _ = x_ref.shape
    B = out_ref.shape[0]
    T = TB // B
    H = wh_ref.shape[0]

    # Hoisted input projection + bias for all time steps at once:
    # one (T*B, F) @ (F, 4H) MXU call instead of T dependent (B, F) calls.
    pre = (
        jnp.dot(x_ref[...], wx_ref[...], preferred_element_type=jnp.float32)
        + b_ref[...]
    )  # (T*B, 4H)

    wh = wh_ref[...]
    h = jnp.zeros((B, H), jnp.float32)
    c = jnp.zeros((B, H), jnp.float32)

    # T is a small compile-time constant -> fully unrolled recurrence; h/c
    # live in vregs (no VMEM scratch on the serialized dependence chain).
    for t in range(T):
        gates = pre[t * B:(t + 1) * B, :] + jnp.dot(
            h, wh, preferred_element_type=jnp.float32
        )  # (B, 4H)

        # One uniform sigmoid over all 4H lanes. The g-gate pre-activation was
        # pre-scaled by 2 in the wrapper, so tanh(x) = 2*sigmoid(2x) - 1 gives
        # the cell activation with a cheap VPU fixup.
        s = jax.nn.sigmoid(gates)
        i = s[:, 0 * H:1 * H]
        f = s[:, 1 * H:2 * H]
        g = 2.0 * s[:, 2 * H:3 * H] - 1.0
        o = s[:, 3 * H:4 * H]

        c = f * c + i * g
        h = o * jnp.tanh(c)

    # Final linear head on the last hidden state.
    out_ref[...] = (
        jnp.dot(h, wo_ref[...], preferred_element_type=jnp.float32) + bo_ref[...]
    )


def _rnn_forward_impl(x_btf, wx, wh, b, wo, bo):
    B, T, F = x_btf.shape
    H = wh.shape[0]

    # Pre-scale the g-gate (cell) columns by 2 so the kernel can apply a single
    # uniform sigmoid across all gates (tanh(x) == 2*sigmoid(2x) - 1).
    scale = jnp.ones((1, 4 * H), jnp.float32).at[:, 2 * H:3 * H].set(2.0)
    wx_s = wx * scale
    wh_s = wh * scale
    b_s = b * scale

    # Time-major, flattened: rows for step t are [t*B, (t+1)*B).
    x_2d = jnp.transpose(x_btf, (1, 0, 2)).reshape(T * B, F)

    return pl.pallas_call(
        lstm_head_kernel,
        out_shape=jax.ShapeDtypeStruct((B, OUT_DIM), jnp.float32),
        in_specs=[pl.BlockSpec(memory_space=pltpu.MemorySpace.VMEM)] * 6,
        out_specs=pl.BlockSpec(memory_space=pltpu.MemorySpace.VMEM),
    )(x_2d, wx_s, wh_s, b_s, wo, bo)


_rnn_forward_jit = jax.jit(_rnn_forward_impl)


def rnn_forward(x_btf, params):
    """x_btf: (B, T, F) float32 (PyTorch batch_first layout)."""
    wx, wh, b, wo, bo = params
    return _rnn_forward_jit(x_btf, wx, wh, b, wo, bo)


def init_params(key):
    """Deterministic init mimicking PyTorch's uniform(-1/sqrt(H), 1/sqrt(H))."""
    k1, k2, k3, k4, k5, k6 = jax.random.split(key, 6)
    bound = 1.0 / jnp.sqrt(jnp.float32(HIDDEN))
    # PyTorch stores W_ih: (4H, F), W_hh: (4H, H); we pre-transpose for x @ W.
    w_ih = jax.random.uniform(k1, (4 * HIDDEN, INPUT_SIZE), jnp.float32, -bound, bound)
    w_hh = jax.random.uniform(k2, (4 * HIDDEN, HIDDEN), jnp.float32, -bound, bound)
    b_ih = jax.random.uniform(k3, (4 * HIDDEN,), jnp.float32, -bound, bound)
    b_hh = jax.random.uniform(k4, (4 * HIDDEN,), jnp.float32, -bound, bound)
    w_out = jax.random.uniform(k5, (OUT_DIM, HIDDEN), jnp.float32, -bound, bound)
    b_out = jax.random.uniform(k6, (OUT_DIM,), jnp.float32, -bound, bound)

    wx = w_ih.T                                  # (F, 4H)
    wh = w_hh.T                                  # (H, 4H)
    b = (b_ih + b_hh).reshape(1, 4 * HIDDEN)     # (1, 4H)
    wo = w_out.T                                 # (H, OUT)
    bo = b_out.reshape(1, OUT_DIM)               # (1, OUT)
    return wx, wh, b, wo, bo


def rnn_reference(x_btf, params):
    """Pure-JAX reference of the same LSTM + Linear (for correctness check)."""
    wx, wh, b, wo, bo = params
    B, T, F = x_btf.shape
    H = wh.shape[0]
    h = jnp.zeros((B, H), jnp.float32)
    c = jnp.zeros((B, H), jnp.float32)
    for t in range(T):
        gates = x_btf[:, t, :] @ wx + h @ wh + b
        i = jax.nn.sigmoid(gates[:, 0 * H:1 * H])
        f = jax.nn.sigmoid(gates[:, 1 * H:2 * H])
        g = jnp.tanh(gates[:, 2 * H:3 * H])
        o = jax.nn.sigmoid(gates[:, 3 * H:4 * H])
        c = f * c + i * g
        h = o * jnp.tanh(c)
    return h @ wo + bo


if __name__ == "__main__":
    key = jax.random.PRNGKey(0)
    kp, kx = jax.random.split(key)
    params = init_params(kp)

    B, T = 2, 8
    x = jax.random.normal(kx, (B, T, INPUT_SIZE), jnp.float32)

    out = rnn_forward(x, params)
    out = jax.block_until_ready(out)

    ref = rnn_reference(x, params)
    assert out.shape == (B, OUT_DIM)
    assert jnp.allclose(out, ref, atol=1e-4, rtol=1e-4), "mismatch vs reference"

    print("KERNEL_OK")
</pallas_src>

<mosaic_0001>
module attributes {stable_mosaic.version = 11 : i64} {
  func.func @lstm_head_kernel(%arg0: memref<16x39xf32, #tpu.memory_space<vmem>>, %arg1: memref<39x256xf32, #tpu.memory_space<vmem>>, %arg2: memref<64x256xf32, #tpu.memory_space<vmem>>, %arg3: memref<1x256xf32, #tpu.memory_space<vmem>>, %arg4: memref<64x2xf32, #tpu.memory_space<vmem>>, %arg5: memref<1x2xf32, #tpu.memory_space<vmem>>, %arg6: memref<2x2xf32, #tpu.memory_space<vmem>>) attributes {dimension_semantics = [], scalar_prefetch = 0 : i64, scratch_operands = 0 : i64, tpu.core_type = #tpu.core_type<tc>} {
    %c0 = arith.constant 0 : index
    %c0_0 = arith.constant 0 : index
    %0 = vector.load %arg0[%c0, %c0_0] : memref<16x39xf32, #tpu.memory_space<vmem>>, vector<16x39xf32>
    %c0_1 = arith.constant 0 : index
    %c0_2 = arith.constant 0 : index
    %1 = vector.load %arg1[%c0_1, %c0_2] : memref<39x256xf32, #tpu.memory_space<vmem>>, vector<39x256xf32>
    %cst = arith.constant dense<0.000000e+00> : vector<16x256xf32>
    %2 = tpu.matmul %0, %1, %cst {dimension_numbers = #tpu.dot_dimension_numbers<[1], [0], [0], [1], [0, 0, 1, 1], [], []>} : vector<16x39xf32>, vector<39x256xf32>, vector<16x256xf32> -> vector<16x256xf32>
    %c0_3 = arith.constant 0 : index
    %c0_4 = arith.constant 0 : index
    %3 = vector.load %arg3[%c0_3, %c0_4] : memref<1x256xf32, #tpu.memory_space<vmem>>, vector<1x256xf32>
    %4 = vector.broadcast %3 : vector<1x256xf32> to vector<16x256xf32>
    %5 = arith.addf %2, %4 : vector<16x256xf32>
    %c0_5 = arith.constant 0 : index
    %c0_6 = arith.constant 0 : index
    %6 = vector.load %arg2[%c0_5, %c0_6] : memref<64x256xf32, #tpu.memory_space<vmem>>, vector<64x256xf32>
    %cst_7 = arith.constant 0.000000e+00 : f32
    %7 = vector.broadcast %cst_7 : f32 to vector<2x64xf32>
    %cst_8 = arith.constant 0.000000e+00 : f32
    %8 = vector.broadcast %cst_8 : f32 to vector<2x64xf32>
    %9 = vector.extract_strided_slice %5 {offsets = [0, 0], sizes = [2, 256], strides = [1, 1]} : vector<16x256xf32> to vector<2x256xf32>
    %cst_9 = arith.constant dense<0.000000e+00> : vector<2x256xf32>
    %10 = tpu.matmul %7, %6, %cst_9 {dimension_numbers = #tpu.dot_dimension_numbers<[1], [0], [0], [1], [0, 0, 1, 1], [], []>} : vector<2x64xf32>, vector<64x256xf32>, vector<2x256xf32> -> vector<2x256xf32>
    %11 = arith.addf %9, %10 : vector<2x256xf32>
    %12 = arith.negf %11 : vector<2x256xf32>
    %13 = math.exp %12 : vector<2x256xf32>
    %cst_10 = arith.constant 1.000000e+00 : f32
    %14 = vector.broadcast %cst_10 : f32 to vector<2x256xf32>
    %15 = arith.addf %14, %13 : vector<2x256xf32>
    %16 = arith.divf %14, %15 : vector<2x256xf32>
    %17 = vector.extract_strided_slice %16 {offsets = [0, 0], sizes = [2, 64], strides = [1, 1]} : vector<2x256xf32> to vector<2x64xf32>
    %18 = vector.extract_strided_slice %16 {offsets = [0, 64], sizes = [2, 64], strides = [1, 1]} : vector<2x256xf32> to vector<2x64xf32>
    %19 = vector.extract_strided_slice %16 {offsets = [0, 128], sizes = [2, 64], strides = [1, 1]} : vector<2x256xf32> to vector<2x64xf32>
    %cst_11 = arith.constant 2.000000e+00 : f32
    %20 = vector.broadcast %cst_11 : f32 to vector<2x64xf32>
    %21 = arith.mulf %20, %19 : vector<2x64xf32>
    %cst_12 = arith.constant 1.000000e+00 : f32
    %22 = vector.broadcast %cst_12 : f32 to vector<2x64xf32>
    %23 = arith.subf %21, %22 : vector<2x64xf32>
    %24 = vector.extract_strided_slice %16 {offsets = [0, 192], sizes = [2, 64], strides = [1, 1]} : vector<2x256xf32> to vector<2x64xf32>
    %25 = arith.mulf %18, %8 : vector<2x64xf32>
    %26 = arith.mulf %17, %23 : vector<2x64xf32>
    %27 = arith.addf %25, %26 : vector<2x64xf32>
    %28 = math.tanh %27 : vector<2x64xf32>
    %29 = arith.mulf %24, %28 : vector<2x64xf32>
    %30 = vector.extract_strided_slice %5 {offsets = [2, 0], sizes = [2, 256], strides = [1, 1]} : vector<16x256xf32> to vector<2x256xf32>
    %cst_13 = arith.constant dense<0.000000e+00> : vector<2x256xf32>
    %31 = tpu.matmul %29, %6, %cst_13 {dimension_numbers = #tpu.dot_dimension_numbers<[1], [0], [0], [1], [0, 0, 1, 1], [], []>} : vector<2x64xf32>, vector<64x256xf32>, vector<2x256xf32> -> vector<2x256xf32>
    %32 = arith.addf %30, %31 : vector<2x256xf32>
    %33 = arith.negf %32 : vector<2x256xf32>
    %34 = math.exp %33 : vector<2x256xf32>
    %cst_14 = arith.constant 1.000000e+00 : f32
    %35 = vector.broadcast %cst_14 : f32 to vector<2x256xf32>
    %36 = arith.addf %35, %34 : vector<2x256xf32>
    %37 = arith.divf %35, %36 : vector<2x256xf32>
    %38 = vector.extract_strided_slice %37 {offsets = [0, 0], sizes = [2, 64], strides = [1, 1]} : vector<2x256xf32> to vector<2x64xf32>
    %39 = vector.extract_strided_slice %37 {offsets = [0, 64], sizes = [2, 64], strides = [1, 1]} : vector<2x256xf32> to vector<2x64xf32>
    %40 = vector.extract_strided_slice %37 {offsets = [0, 128], sizes = [2, 64], strides = [1, 1]} : vector<2x256xf32> to vector<2x64xf32>
    %cst_15 = arith.constant 2.000000e+00 : f32
    %41 = vector.broadcast %cst_15 : f32 to vector<2x64xf32>
    %42 = arith.mulf %41, %40 : vector<2x64xf32>
    %cst_16 = arith.constant 1.000000e+00 : f32
    %43 = vector.broadcast %cst_16 : f32 to vector<2x64xf32>
    %44 = arith.subf %42, %43 : vector<2x64xf32>
    %45 = vector.extract_strided_slice %37 {offsets = [0, 192], sizes = [2, 64], strides = [1, 1]} : vector<2x256xf32> to vector<2x64xf32>
    %46 = arith.mulf %39, %27 : vector<2x64xf32>
    %47 = arith.mulf %38, %44 : vector<2x64xf32>
    %48 = arith.addf %46, %47 : vector<2x64xf32>
    %49 = math.tanh %48 : vector<2x64xf32>
    %50 = arith.mulf %45, %49 : vector<2x64xf32>
    %51 = vector.extract_strided_slice %5 {offsets = [4, 0], sizes = [2, 256], strides = [1, 1]} : vector<16x256xf32> to vector<2x256xf32>
    %cst_17 = arith.constant dense<0.000000e+00> : vector<2x256xf32>
    %52 = tpu.matmul %50, %6, %cst_17 {dimension_numbers = #tpu.dot_dimension_numbers<[1], [0], [0], [1], [0, 0, 1, 1], [], []>} : vector<2x64xf32>, vector<64x256xf32>, vector<2x256xf32> -> vector<2x256xf32>
    %53 = arith.addf %51, %52 : vector<2x256xf32>
    %54 = arith.negf %53 : vector<2x256xf32>
    %55 = math.exp %54 : vector<2x256xf32>
    %cst_18 = arith.constant 1.000000e+00 : f32
    %56 = vector.broadcast %cst_18 : f32 to vector<2x256xf32>
    %57 = arith.addf %56, %55 : vector<2x256xf32>
    %58 = arith.divf %56, %57 : vector<2x256xf32>
    %59 = vector.extract_strided_slice %58 {offsets = [0, 0], sizes = [2, 64], strides = [1, 1]} : vector<2x256xf32> to vector<2x64xf32>
    %60 = vector.extract_strided_slice %58 {offsets = [0, 64], sizes = [2, 64], strides = [1, 1]} : vector<2x256xf32> to vector<2x64xf32>
    %61 = vector.extract_strided_slice %58 {offsets = [0, 128], sizes = [2, 64], strides = [1, 1]} : vector<2x256xf32> to vector<2x64xf32>
    %cst_19 = arith.constant 2.000000e+00 : f32
    %62 = vector.broadcast %cst_19 : f32 to vector<2x64xf32>
    %63 = arith.mulf %62, %61 : vector<2x64xf32>
    %cst_20 = arith.constant 1.000000e+00 : f32
    %64 = vector.broadcast %cst_20 : f32 to vector<2x64xf32>
    %65 = arith.subf %63, %64 : vector<2x64xf32>
    %66 = vector.extract_strided_slice %58 {offsets = [0, 192], sizes = [2, 64], strides = [1, 1]} : vector<2x256xf32> to vector<2x64xf32>
    %67 = arith.mulf %60, %48 : vector<2x64xf32>
    %68 = arith.mulf %59, %65 : vector<2x64xf32>
    %69 = arith.addf %67, %68 : vector<2x64xf32>
    %70 = math.tanh %69 : vector<2x64xf32>
    %71 = arith.mulf %66, %70 : vector<2x64xf32>
    %72 = vector.extract_strided_slice %5 {offsets = [6, 0], sizes = [2, 256], strides = [1, 1]} : vector<16x256xf32> to vector<2x256xf32>
    %cst_21 = arith.constant dense<0.000000e+00> : vector<2x256xf32>
    %73 = tpu.matmul %71, %6, %cst_21 {dimension_numbers = #tpu.dot_dimension_numbers<[1], [0], [0], [1], [0, 0, 1, 1], [], []>} : vector<2x64xf32>, vector<64x256xf32>, vector<2x256xf32> -> vector<2x256xf32>
    %74 = arith.addf %72, %73 : vector<2x256xf32>
    %75 = arith.negf %74 : vector<2x256xf32>
    %76 = math.exp %75 : vector<2x256xf32>
    %cst_22 = arith.constant 1.000000e+00 : f32
    %77 = vector.broadcast %cst_22 : f32 to vector<2x256xf32>
    %78 = arith.addf %77, %76 : vector<2x256xf32>
    %79 = arith.divf %77, %78 : vector<2x256xf32>
    %80 = vector.extract_strided_slice %79 {offsets = [0, 0], sizes = [2, 64], strides = [1, 1]} : vector<2x256xf32> to vector<2x64xf32>
    %81 = vector.extract_strided_slice %79 {offsets = [0, 64], sizes = [2, 64], strides = [1, 1]} : vector<2x256xf32> to vector<2x64xf32>
    %82 = vector.extract_strided_slice %79 {offsets = [0, 128], sizes = [2, 64], strides = [1, 1]} : vector<2x256xf32> to vector<2x64xf32>
    %cst_23 = arith.constant 2.000000e+00 : f32
    %83 = vector.broadcast %cst_23 : f32 to vector<2x64xf32>
    %84 = arith.mulf %83, %82 : vector<2x64xf32>
    %cst_24 = arith.constant 1.000000e+00 : f32
    %85 = vector.broadcast %cst_24 : f32 to vector<2x64xf32>
    %86 = arith.subf %84, %85 : vector<2x64xf32>
    %87 = vector.extract_strided_slice %79 {offsets = [0, 192], sizes = [2, 64], strides = [1, 1]} : vector<2x256xf32> to vector<2x64xf32>
    %88 = arith.mulf %81, %69 : vector<2x64xf32>
    %89 = arith.mulf %80, %86 : vector<2x64xf32>
    %90 = arith.addf %88, %89 : vector<2x64xf32>
    %91 = math.tanh %90 : vector<2x64xf32>
    %92 = arith.mulf %87, %91 : vector<2x64xf32>
    %93 = vector.extract_strided_slice %5 {offsets = [8, 0], sizes = [2, 256], strides = [1, 1]} : vector<16x256xf32> to vector<2x256xf32>
    %cst_25 = arith.constant dense<0.000000e+00> : vector<2x256xf32>
    %94 = tpu.matmul %92, %6, %cst_25 {dimension_numbers = #tpu.dot_dimension_numbers<[1], [0], [0], [1], [0, 0, 1, 1], [], []>} : vector<2x64xf32>, vector<64x256xf32>, vector<2x256xf32> -> vector<2x256xf32>
    %95 = arith.addf %93, %94 : vector<2x256xf32>
    %96 = arith.negf %95 : vector<2x256xf32>
    %97 = math.exp %96 : vector<2x256xf32>
    %cst_26 = arith.constant 1.000000e+00 : f32
    %98 = vector.broadcast %cst_26 : f32 to vector<2x256xf32>
    %99 = arith.addf %98, %97 : vector<2x256xf32>
    %100 = arith.divf %98, %99 : vector<2x256xf32>
    %101 = vector.extract_strided_slice %100 {offsets = [0, 0], sizes = [2, 64], strides = [1, 1]} : vector<2x256xf32> to vector<2x64xf32>
    %102 = vector.extract_strided_slice %100 {offsets = [0, 64], sizes = [2, 64], strides = [1, 1]} : vector<2x256xf32> to vector<2x64xf32>
    %103 = vector.extract_strided_slice %100 {offsets = [0, 128], sizes = [2, 64], strides = [1, 1]} : vector<2x256xf32> to vector<2x64xf32>
    %cst_27 = arith.constant 2.000000e+00 : f32
    %104 = vector.broadcast %cst_27 : f32 to vector<2x64xf32>
    %105 = arith.mulf %104, %103 : vector<2x64xf32>
    %cst_28 = arith.constant 1.000000e+00 : f32
    %106 = vector.broadcast %cst_28 : f32 to vector<2x64xf32>
    %107 = arith.subf %105, %106 : vector<2x64xf32>
    %108 = vector.extract_strided_slice %100 {offsets = [0, 192], sizes = [2, 64], strides = [1, 1]} : vector<2x256xf32> to vector<2x64xf32>
    %109 = arith.mulf %102, %90 : vector<2x64xf32>
    %110 = arith.mulf %101, %107 : vector<2x64xf32>
    %111 = arith.addf %109, %110 : vector<2x64xf32>
    %112 = math.tanh %111 : vector<2x64xf32>
    %113 = arith.mulf %108, %112 : vector<2x64xf32>
    %114 = vector.extract_strided_slice %5 {offsets = [10, 0], sizes = [2, 256], strides = [1, 1]} : vector<16x256xf32> to vector<2x256xf32>
    %cst_29 = arith.constant dense<0.000000e+00> : vector<2x256xf32>
    %115 = tpu.matmul %113, %6, %cst_29 {dimension_numbers = #tpu.dot_dimension_numbers<[1], [0], [0], [1], [0, 0, 1, 1], [], []>} : vector<2x64xf32>, vector<64x256xf32>, vector<2x256xf32> -> vector<2x256xf32>
    %116 = arith.addf %114, %115 : vector<2x256xf32>
    %117 = arith.negf %116 : vector<2x256xf32>
    %118 = math.exp %117 : vector<2x256xf32>
    %cst_30 = arith.constant 1.000000e+00 : f32
    %119 = vector.broadcast %cst_30 : f32 to vector<2x256xf32>
    %120 = arith.addf %119, %118 : vector<2x256xf32>
    %121 = arith.divf %119, %120 : vector<2x256xf32>
    %122 = vector.extract_strided_slice %121 {offsets = [0, 0], sizes = [2, 64], strides = [1, 1]} : vector<2x256xf32> to vector<2x64xf32>
    %123 = vector.extract_strided_slice %121 {offsets = [0, 64], sizes = [2, 64], strides = [1, 1]} : vector<2x256xf32> to vector<2x64xf32>
    %124 = vector.extract_strided_slice %121 {offsets = [0, 128], sizes = [2, 64], strides = [1, 1]} : vector<2x256xf32> to vector<2x64xf32>
    %cst_31 = arith.constant 2.000000e+00 : f32
    %125 = vector.broadcast %cst_31 : f32 to vector<2x64xf32>
    %126 = arith.mulf %125, %124 : vector<2x64xf32>
    %cst_32 = arith.constant 1.000000e+00 : f32
    %127 = vector.broadcast %cst_32 : f32 to vector<2x64xf32>
    %128 = arith.subf %126, %127 : vector<2x64xf32>
    %129 = vector.extract_strided_slice %121 {offsets = [0, 192], sizes = [2, 64], strides = [1, 1]} : vector<2x256xf32> to vector<2x64xf32>
    %130 = arith.mulf %123, %111 : vector<2x64xf32>
    %131 = arith.mulf %122, %128 : vector<2x64xf32>
    %132 = arith.addf %130, %131 : vector<2x64xf32>
    %133 = math.tanh %132 : vector<2x64xf32>
    %134 = arith.mulf %129, %133 : vector<2x64xf32>
    %135 = vector.extract_strided_slice %5 {offsets = [12, 0], sizes = [2, 256], strides = [1, 1]} : vector<16x256xf32> to vector<2x256xf32>
    %cst_33 = arith.constant dense<0.000000e+00> : vector<2x256xf32>
    %136 = tpu.matmul %134, %6, %cst_33 {dimension_numbers = #tpu.dot_dimension_numbers<[1], [0], [0], [1], [0, 0, 1, 1], [], []>} : vector<2x64xf32>, vector<64x256xf32>, vector<2x256xf32> -> vector<2x256xf32>
    %137 = arith.addf %135, %136 : vector<2x256xf32>
    %138 = arith.negf %137 : vector<2x256xf32>
    %139 = math.exp %138 : vector<2x256xf32>
    %cst_34 = arith.constant 1.000000e+00 : f32
    %140 = vector.broadcast %cst_34 : f32 to vector<2x256xf32>
    %141 = arith.addf %140, %139 : vector<2x256xf32>
    %142 = arith.divf %140, %141 : vector<2x256xf32>
    %143 = vector.extract_strided_slice %142 {offsets = [0, 0], sizes = [2, 64], strides = [1, 1]} : vector<2x256xf32> to vector<2x64xf32>
    %144 = vector.extract_strided_slice %142 {offsets = [0, 64], sizes = [2, 64], strides = [1, 1]} : vector<2x256xf32> to vector<2x64xf32>
    %145 = vector.extract_strided_slice %142 {offsets = [0, 128], sizes = [2, 64], strides = [1, 1]} : vector<2x256xf32> to vector<2x64xf32>
    %cst_35 = arith.constant 2.000000e+00 : f32
    %146 = vector.broadcast %cst_35 : f32 to vector<2x64xf32>
    %147 = arith.mulf %146, %145 : vector<2x64xf32>
    %cst_36 = arith.constant 1.000000e+00 : f32
    %148 = vector.broadcast %cst_36 : f32 to vector<2x64xf32>
    %149 = arith.subf %147, %148 : vector<2x64xf32>
    %150 = vector.extract_strided_slice %142 {offsets = [0, 192], sizes = [2, 64], strides = [1, 1]} : vector<2x256xf32> to vector<2x64xf32>
    %151 = arith.mulf %144, %132 : vector<2x64xf32>
    %152 = arith.mulf %143, %149 : vector<2x64xf32>
    %153 = arith.addf %151, %152 : vector<2x64xf32>
    %154 = math.tanh %153 : vector<2x64xf32>
    %155 = arith.mulf %150, %154 : vector<2x64xf32>
    %156 = vector.extract_strided_slice %5 {offsets = [14, 0], sizes = [2, 256], strides = [1, 1]} : vector<16x256xf32> to vector<2x256xf32>
    %cst_37 = arith.constant dense<0.000000e+00> : vector<2x256xf32>
    %157 = tpu.matmul %155, %6, %cst_37 {dimension_numbers = #tpu.dot_dimension_numbers<[1], [0], [0], [1], [0, 0, 1, 1], [], []>} : vector<2x64xf32>, vector<64x256xf32>, vector<2x256xf32> -> vector<2x256xf32>
    %158 = arith.addf %156, %157 : vector<2x256xf32>
    %159 = arith.negf %158 : vector<2x256xf32>
    %160 = math.exp %159 : vector<2x256xf32>
    %cst_38 = arith.constant 1.000000e+00 : f32
    %161 = vector.broadcast %cst_38 : f32 to vector<2x256xf32>
    %162 = arith.addf %161, %160 : vector<2x256xf32>
    %163 = arith.divf %161, %162 : vector<2x256xf32>
    %164 = vector.extract_strided_slice %163 {offsets = [0, 0], sizes = [2, 64], strides = [1, 1]} : vector<2x256xf32> to vector<2x64xf32>
    %165 = vector.extract_strided_slice %163 {offsets = [0, 64], sizes = [2, 64], strides = [1, 1]} : vector<2x256xf32> to vector<2x64xf32>
    %166 = vector.extract_strided_slice %163 {offsets = [0, 128], sizes = [2, 64], strides = [1, 1]} : vector<2x256xf32> to vector<2x64xf32>
    %cst_39 = arith.constant 2.000000e+00 : f32
    %167 = vector.broadcast %cst_39 : f32 to vector<2x64xf32>
    %168 = arith.mulf %167, %166 : vector<2x64xf32>
    %cst_40 = arith.constant 1.000000e+00 : f32
    %169 = vector.broadcast %cst_40 : f32 to vector<2x64xf32>
    %170 = arith.subf %168, %169 : vector<2x64xf32>
    %171 = vector.extract_strided_slice %163 {offsets = [0, 192], sizes = [2, 64], strides = [1, 1]} : vector<2x256xf32> to vector<2x64xf32>
    %172 = arith.mulf %165, %153 : vector<2x64xf32>
    %173 = arith.mulf %164, %170 : vector<2x64xf32>
    %174 = arith.addf %172, %173 : vector<2x64xf32>
    %175 = math.tanh %174 : vector<2x64xf32>
    %176 = arith.mulf %171, %175 : vector<2x64xf32>
    %c0_41 = arith.constant 0 : index
    %c0_42 = arith.constant 0 : index
    %177 = vector.load %arg4[%c0_41, %c0_42] : memref<64x2xf32, #tpu.memory_space<vmem>>, vector<64x2xf32>
    %cst_43 = arith.constant dense<0.000000e+00> : vector<2x2xf32>
    %178 = tpu.matmul %176, %177, %cst_43 {dimension_numbers = #tpu.dot_dimension_numbers<[1], [0], [0], [1], [0, 0, 1, 1], [], []>} : vector<2x64xf32>, vector<64x2xf32>, vector<2x2xf32> -> vector<2x2xf32>
    %c0_44 = arith.constant 0 : index
    %c0_45 = arith.constant 0 : index
    %179 = vector.load %arg5[%c0_44, %c0_45] : memref<1x2xf32, #tpu.memory_space<vmem>>, vector<1x2xf32>
    %180 = vector.broadcast %179 : vector<1x2xf32> to vector<2x2xf32>
    %181 = arith.addf %178, %180 : vector<2x2xf32>
    %c0_46 = arith.constant 0 : index
    %c0_47 = arith.constant 0 : index
    %182 = vector.load %arg6[%c0_46, %c0_47] : memref<2x2xf32, #tpu.memory_space<vmem>>, vector<2x2xf32>
    tpu.vector_store %arg6[%c0_46, %c0_47], %181 {strides = array<i32>} : memref<2x2xf32, #tpu.memory_space<vmem>>, vector<2x2xf32>,
    return
  }
}

</mosaic_0001>

<bundles_post_ra>
// kernel: mul.17
= control target key start
LH: loop header
LB: loop body
LE: loop exit
PB: predicated region body
PF: predicated region fallthrough
CT: control target
= control target key end

     0   :  { %s56_s0 = inlined_call_operand.vmem [shape: f32[1,256], index: 0, kind: input, shape index: {}]   ;;  %s57_s1 = inlined_call_operand.vmem [shape: f32[1,256], index: 1, kind: input, shape index: {}]   ;;  %s58_s2 = inlined_call_operand.vmem [shape: f32[1,256], index: 2, kind: output, shape index: {}]  }
   0x1   :  { %v3_v0 = vld [vmem:[%s56_s0] sm:$0x1]  ;;  %v20_v2 = vld [vmem:[%s56_s0 + $0x1] sm:$0x1] }
   0x2   :  { %v4_v1 = vld [vmem:[%s57_s1] sm:$0x1]  ;;  %v21_v4 = vld [vmem:[%s57_s1 + $0x1] sm:$0x1] }
   0x3   :  { %v7_v3 = vmul.f32 %v4_v1, %v3_v0  ;;  %v16_v5 = vmul.f32 %v21_v4, %v20_v2 }
   0x5   :  { %9 = vst [vmem:[%s58_s2] sm:$0x1] %v7_v3 }
   0x6   :  { %22 = vst [vmem:[%s58_s2 + $0x1] sm:$0x1] %v16_v5 }

// kernel: _rnn_forward_impl.1
= control target key start
LH: loop header
LB: loop body
LE: loop exit
PB: predicated region body
PF: predicated region fallthrough
CT: control target
= control target key end

     0   :  { %vm49_vm0 = vcmask 1046528   ;;  %s1562_s0 = inlined_call_operand.vmem [shape: f32[16,39], index: 0, kind: input, shape index: {}]   ;;  %s1563_s1 = inlined_call_operand.vmem [shape: f32[39,256], index: 1, kind: input, shape index: {}]   ;;  %s1564_s2 = inlined_call_operand.vmem [shape: f32[64,256], index: 2, kind: input, shape index: {}]   ;;  %s1565_s3 = inlined_call_operand.vmem [shape: f32[1,256], index: 3, kind: input, shape index: {}]   ;;  %s1566_s4 = inlined_call_operand.vmem [shape: f32[64,2], index: 4, kind: input, shape index: {}]   ;;  %s1567_s5 = inlined_call_operand.vmem [shape: f32[1,2], index: 5, kind: input, shape index: {}]   ;;  %s1568_s6 = inlined_call_operand.hbm [shape: f32[2,2], index: 6, kind: output, shape index: {}]  }
   0x1   :  { %v1199_v0 = vld [vmem:[%s1564_s2 + $0x70] sm:$0xff]  ;;  %v1204_v1 = vld [vmem:[%s1564_s2 + $0x78] sm:$0xff]  ;;  %v1209_v2 = vld [vmem:[%s1564_s2 + $0x60] sm:$0xff] }
   0x2   :  { %130 = vmatpush.msra.mxu2 %v1199_v0  ;;  %150 = vmatpush.msra.mxu3 %v1204_v1  ;;  %v1216_v3 = vld [vmem:[%s1564_s2 + $0x68] sm:$0xff]  ;;  %v1221_v4 = vld [vmem:[%s1564_s2 + $0x50] sm:$0xff]  ;;  %v1226_v5 = vld [vmem:[%s1564_s2 + $0x58] sm:$0xff] }
   0x3   :  { %v34_v6 = vld [vmem:[%s1563_s1 + $0x40] sm:$0x7f]  ;;  %v35_v7 = vld [vmem:[%s1563_s1 + $0x48] sm:$0x7f]  ;;  %v32_v10 = vld [vmem:[%s1563_s1 + $0x30] sm:$0xff] }
   0x4   :  { %131 = vmatpush.msra.mxu2 %v1209_v2  ;;  %151 = vmatpush.msra.mxu3 %v1216_v3  ;;  %v1239_v8 = vld [vmem:[%s1564_s2 + $0x40] sm:$0xff]  ;;  %v1244_v9 = vld [vmem:[%s1564_s2 + $0x48] sm:$0xff]  ;;  %v1254_v11 = vld [vmem:[%s1564_s2 + $0x30] sm:$0xff] }
   0x5   :  { %1003 = vmatpush.msk.msra.mxu0 %vm49_vm0, %v34_v6  ;;  %1006 = vmatpush.msk.msra.mxu1 %vm49_vm0, %v35_v7  ;;  %v33_v12 = vld [vmem:[%s1563_s1 + $0x38] sm:$0xff]  ;;  %v30_v14 = vld [vmem:[%s1563_s1 + $0x20] sm:$0xff]  ;;  %v31_v15 = vld [vmem:[%s1563_s1 + $0x28] sm:$0xff] }
   0x6   :  { %132 = vmatpush.msra.mxu2 %v1221_v4  ;;  %152 = vmatpush.msra.mxu3 %v1226_v5  ;;  %v1262_v13 = vld [vmem:[%s1564_s2 + $0x38] sm:$0xff]  ;;  %v28_v16 = vld [vmem:[%s1563_s1 + $0x10] sm:$0xff]  ;;  %v1281_v18 = vld [vmem:[%s1564_s2 + $0x20] sm:$0xff] }
   0x7   :  { %68 = vmatpush.msra.mxu0 %v32_v10  ;;  %91 = vmatpush.msra.mxu1 %v33_v12  ;;  %v29_v17 = vld [vmem:[%s1563_s1 + $0x18] sm:$0xff]  ;;  %v1286_v19 = vld [vmem:[%s1564_s2 + $0x28] sm:$0xff]  ;;  %v26_v20 = vld [vmem:[%s1563_s1] sm:$0xff] }
   0x8   :  { %133 = vmatpush.msra.mxu2 %v1239_v8  ;;  %153 = vmatpush.msra.mxu3 %v1244_v9  ;;  %v27_v21 = vld [vmem:[%s1563_s1 + $0x8] sm:$0xff] }
   0x9   :  { %69 = vmatpush.msra.mxu0 %v30_v14  ;;  %92 = vmatpush.msra.mxu1 %v31_v15 }
   0xa   :  { %134 = vmatpush.msra.mxu2 %v1254_v11  ;;  %154 = vmatpush.msra.mxu3 %v1262_v13 }
   0xb   :  { %11 = vsyncpa [#allocation3], 0  ;;  %v1299_v22 = vld [vmem:[%s1564_s2 + $0x10] sm:$0xff]  ;;  %v1304_v23 = vld [vmem:[%s1564_s2 + $0x18] sm:$0xff]  ;;  %70 = vmatpush.msra.mxu0 %v28_v16  ;;  %93 = vmatpush.msra.mxu1 %v29_v17  ;;  %vm42_vm1 = vcmask 318464   ;;  %v1158_v27 = vmov 0.0  }
   0xc   :  { %135 = vmatpush.msra.mxu2 %v1281_v18  ;;  %155 = vmatpush.msra.mxu3 %v1286_v19  ;;  %v24_v24 = vld [vmem:[%s1562_s0] sm:$0xff]  ;;  %v1319_v26 = vld [vmem:[%s1564_s2 + $0x8] sm:$0xff]  ;;  %vm118_vm10 = vcmask 523264   ;;  %s1160_s22 = smov [#allocation2]   ;;  %s994_s24 = sshll.u32 %s1568_s6, 4  ;;  %s995_s24 = int_to_ptr.hbm [resolvable:$true] %s994_s24 }
   0xd   :  { %v1314_v25 = vld [vmem:[%s1564_s2] sm:$0xff]  ;;  %71 = vmatpush.msra.mxu0 %v26_v20  ;;  %94 = vmatpush.msra.mxu1 %v27_v21  ;;  %v25_v14 = vld [vmem:[%s1562_s0 + $0x8] sm:$0xff]  ;;  %s992_s1 = sshll.u32 %s1160_s22, 4  ;;  %s993_s1 = int_to_ptr.vmem [resolvable:$true] %s992_s1 }
   0xe   :  { %136 = vmatpush.msra.mxu2 %v1299_v22  ;;  %156 = vmatpush.msra.mxu3 %v1304_v23  ;;  %v1394_v28 = vld [vmem:[%s1565_s3] sm:$0x3]  ;;  %s1159_s3 = smov 64  }
   0xf   :  { %1004 = vmatmul.msk.f32.vlgmr.msra.gmra.mxu0 %vm42_vm1, %v24_v24  ;;  %1007 = vmatmul.msk.f32.vlgmr.msra.gmra.mxu1 %vm42_vm1, %v24_v24  ;;  %v38_v29 = vperm.slane %v1394_v28, 0  ;;  %v39_v30 = vperm.slane %v1394_v28, 1 }
  0x10   :  { %137 = vmatpush.msra.mxu2 %v1314_v25  ;;  %157 = vmatpush.msra.mxu3 %v1319_v26 }
  0x11   :  { %138 = vmatmul.f32.vlgmr.msra.gmra.mxu2 %v1158_v27  ;;  %158 = vmatmul.f32.vlgmr.msra.gmra.mxu3 %v1158_v27 }
  0x12   :  { %246 = vmatpush.msrb.mxu1 %v1204_v1  ;;  %226 = vmatpush.msrb.mxu0 %v1199_v0 }
  0x13   :  { %332 = vmatpush.msrb.mxu2 %v1199_v0  ;;  %352 = vmatpush.msrb.mxu3 %v1204_v1 }
  0x14   :  { %247 = vmatpush.msrb.mxu1 %v1216_v3  ;;  %227 = vmatpush.msrb.mxu0 %v1209_v2 }
  0x15   :  { %333 = vmatpush.msrb.mxu2 %v1209_v2  ;;  %353 = vmatpush.msrb.mxu3 %v1216_v3 }
  0x16   :  { %248 = vmatpush.msrb.mxu1 %v1226_v5  ;;  %228 = vmatpush.msrb.mxu0 %v1221_v4 }
  0x17   :  { %334 = vmatpush.msrb.mxu2 %v1221_v4  ;;  %354 = vmatpush.msrb.mxu3 %v1226_v5 }
  0x18   :  { %249 = vmatpush.msrb.mxu1 %v1244_v9  ;;  %229 = vmatpush.msrb.mxu0 %v1239_v8 }
  0x19   :  { %335 = vmatpush.msrb.mxu2 %v1239_v8  ;;  %355 = vmatpush.msrb.mxu3 %v1244_v9 }
  0x1a   :  { %250 = vmatpush.msrb.mxu1 %v1262_v13  ;;  %230 = vmatpush.msrb.mxu0 %v1254_v11 }
  0x1b   :  { %336 = vmatpush.msrb.mxu2 %v1254_v11  ;;  %356 = vmatpush.msrb.mxu3 %v1262_v13 }
  0x1c   :  { %251 = vmatpush.msrb.mxu1 %v1286_v19  ;;  %231 = vmatpush.msrb.mxu0 %v1281_v18 }
  0x1d   :  { %337 = vmatpush.msrb.mxu2 %v1281_v18  ;;  %357 = vmatpush.msrb.mxu3 %v1286_v19 }
  0x1e   :  { %252 = vmatpush.msrb.mxu1 %v1304_v23  ;;  %232 = vmatpush.msrb.mxu0 %v1299_v22 }
  0x1f   :  { %338 = vmatpush.msrb.mxu2 %v1299_v22  ;;  %358 = vmatpush.msrb.mxu3 %v1304_v23 }
  0x20   :  { %253 = vmatpush.msrb.mxu1 %v1319_v26  ;;  %233 = vmatpush.msrb.mxu0 %v1314_v25 }
  0x21   :  { %339 = vmatpush.msrb.mxu2 %v1314_v25  ;;  %359 = vmatpush.msrb.mxu3 %v1319_v26 }
  0x22   :  { %438 = vmatpush.msra.mxu0 %v1199_v0  ;;  %458 = vmatpush.msra.mxu1 %v1204_v1 }
  0x23   :  { %544 = vmatpush.msra.mxu2 %v1199_v0  ;;  %564 = vmatpush.msra.mxu3 %v1204_v1 }
  0x24   :  { %439 = vmatpush.msra.mxu0 %v1209_v2  ;;  %459 = vmatpush.msra.mxu1 %v1216_v3 }
  0x25   :  { %545 = vmatpush.msra.mxu2 %v1209_v2  ;;  %565 = vmatpush.msra.mxu3 %v1216_v3 }
  0x26   :  { %440 = vmatpush.msra.mxu0 %v1221_v4  ;;  %460 = vmatpush.msra.mxu1 %v1226_v5 }
  0x27   :  { %546 = vmatpush.msra.mxu2 %v1221_v4  ;;  %566 = vmatpush.msra.mxu3 %v1226_v5 }
  0x28   :  { %441 = vmatpush.msra.mxu0 %v1239_v8  ;;  %461 = vmatpush.msra.mxu1 %v1244_v9 }
  0x29   :  { %547 = vmatpush.msra.mxu2 %v1239_v8  ;;  %567 = vmatpush.msra.mxu3 %v1244_v9 }
  0x2a   :  { %442 = vmatpush.msra.mxu0 %v1254_v11  ;;  %462 = vmatpush.msra.mxu1 %v1262_v13 }
  0x2b   :  { %548 = vmatpush.msra.mxu2 %v1254_v11  ;;  %568 = vmatpush.msra.mxu3 %v1262_v13 }
  0x2c   :  { %443 = vmatpush.msra.mxu0 %v1281_v18  ;;  %463 = vmatpush.msra.mxu1 %v1286_v19 }
  0x2d   :  { %549 = vmatpush.msra.mxu2 %v1281_v18  ;;  %569 = vmatpush.msra.mxu3 %v1286_v19 }
  0x2e   :  { %444 = vmatpush.msra.mxu0 %v1299_v22  ;;  %464 = vmatpush.msra.mxu1 %v1304_v23 }
  0x2f   :  { %550 = vmatpush.msra.mxu2 %v1299_v22  ;;  %570 = vmatpush.msra.mxu3 %v1304_v23 }
  0x30   :  { %445 = vmatpush.msra.mxu0 %v1314_v25  ;;  %465 = vmatpush.msra.mxu1 %v1319_v26 }
  0x31   :  { %551 = vmatpush.msra.mxu2 %v1314_v25  ;;  %571 = vmatpush.msra.mxu3 %v1319_v26 }
  0x32   :  { %1005 = vmatmul.msk.f32.gmra.mxu0 %vm42_vm1, %v25_v14  ;;  %1008 = vmatmul.msk.f32.gmra.mxu1 %vm42_vm1, %v25_v14 }
  0x8c   :  { %v73_v31 = vpop.f32.mrf.mxu0  ;;  %v96_v32 = vpop.f32.mrf.mxu1 }
  0x8d   :  { %v1400_v33 = vadd.f32 %v73_v31, %v38_v29  ;;  %v1404_v34 = vadd.f32 %v96_v32, %v39_v30 }
  0x94   :  { %v139_v35 = vpop.f32.mrf.mxu2  ;;  %v159_v36 = vpop.f32.mrf.mxu3 }
  0x95   :  { %v162_v37 = vadd.f32 %v139_v35, %v1400_v33  ;;  %v163_v38 = vadd.f32 %v159_v36, %v1404_v34 }
  0x97   :  { %v1009_v39 = vmul.f32 -1.442695, %v162_v37  ;;  %v1010_v40 = vmul.f32 -1.442695, %v163_v38 }
  0x99   :  { %1052 = vpow2.f32 %v1009_v39 }
  0x9a   :  { %1054 = vpow2.f32 %v1010_v40 }
  0x9f   :  { %v1053_v41 = vpop.eup %1052 }
  0xa0   :  { %v1055_v42 = vpop.eup %1054  ;;  %v170_v43 = vadd.f32 1.0, %v1053_v41 }
  0xa1   :  { %v171_v44 = vadd.f32 1.0, %v1055_v42 }
  0xa2   :  { %1056 = vrcp.f32 %v170_v43  ;;  %v183_v57 = vand.u32 2147483648, %v170_v43  ;;  %vm177_vm6 = vweird.f32 %v170_v43  ;;  %v181_v59 = vand.u32 2147483647, %v170_v43 }
  0xa3   :  { %1058 = vrcp.f32 %v171_v44  ;;  %v198_v52 = vand.u32 2147483648, %v171_v44  ;;  %v196_v54 = vand.u32 2147483647, %v171_v44  ;;  %vm192_vm4 = vweird.f32 %v171_v44 }
  0xa4   :  { %v184_v6 = vor.u32 1.1754944e-38, %v183_v57  ;;  %vm182_vm9 = vcmp.eq.f32.partialorder %v181_v59, 8.507059e+37 }
  0xa5   :  { %v199_v58 = vor.u32 1.1754944e-38, %v198_v52  ;;  %vm197_vm7 = vcmp.eq.f32.partialorder %v196_v54, 8.507059e+37 }
  0xa8   :  { %v1057_v45 = vpop.eup %1056 }
  0xa9   :  { %v1059_v46 = vpop.eup %1058  ;;  %v173_v47 = vmul.f32 %v1057_v45, %v170_v43  ;;  %vm178_vm3 = vweird.f32 %v1057_v45 }
  0xaa   :  { %v188_v48 = vmul.f32 %v1059_v46, %v171_v44  ;;  %vm193_vm2 = vweird.f32 %v1059_v46  ;;  %vm179_vm8 = vmor %vm177_vm6, %vm178_vm3 }
  0xab   :  { %v174_v49 = vsub.f32 1.0, %v173_v47  ;;  %vm194_vm5 = vmor %vm192_vm4, %vm193_vm2 }
  0xac   :  { %v189_v50 = vsub.f32 1.0, %v188_v48 }
  0xad   :  { %v175_v51 = vmul.f32 %v1057_v45, %v174_v49 }
  0xae   :  { %v190_v53 = vmul.f32 %v1059_v46, %v189_v50 }
  0xaf   :  { %v176_v55 = vadd.f32 %v1057_v45, %v175_v51  ;;  %v1436_v27 = vpop.f32.mrf.mxu0  ;;  %v1438_v31 = vpop.f32.mrf.mxu1 }
  0xb0   :  { %v191_v56 = vadd.f32 %v1059_v46, %v190_v53 }
  0xb1   :  { %v180_v62 = vsel %vm179_vm8, %v1057_v45, %v176_v55 }
  0xb2   :  { %v195_v60 = vsel %vm194_vm5, %v1059_v46, %v191_v56  ;;  %v185_v10 = vsel %vm182_vm9, %v184_v6, %v180_v62 }
  0xb3   :  { %v200_v61 = vsel %vm197_vm7, %v199_v58, %v195_v60  ;;  %v204_v15 = vmul.f32 0.0, %v185_v10 }
  0xb4   :  { %v202_v63 = vmul.f32 2.0, %v200_v61 }
  0xb6   :  { %v1011_v7 = vadd.f32 -1.0, %v202_v63 }
  0xb8   :  { %v205_v12 = vmul.f32 %v1011_v7, %v185_v10 }
  0xba   :  { %207 = vrot.lane.b32.xlu0 %v205_v12, %s1159_s3 }
 0x12c   :  { %v208_v16 = vpop.permute.xlu0 %207 }
 0x12d   :  { %v1414_v17 = vadd.f32 %v208_v16, %v204_v15 }
 0x12f   :  { %1060 = vtanh.f32 %v1414_v17 }
 0x135   :  { %v1061_v20 = vpop.eup %1060 }
 0x136   :  { %v212_v21 = vmul.f32 %v1061_v20, %v200_v61  ;;  %v307_v61 = vrot.slane %v1414_v17, 6 }
 0x138   :  { %214 = vrot.lane.b32.xlu0 %v212_v21, %s1159_s3 }
 0x1aa   :  { %v215_v24 = vpop.permute.xlu0 %214 }
 0x1ab   :  { %1012 = vmatmul.msk.f32.vlgmr.msrb.gmra.mxu0 %vm118_vm10, %v215_v24  ;;  %1013 = vmatmul.msk.f32.vlgmr.msrb.gmra.mxu1 %vm118_vm10, %v215_v24 }
 0x1ac   :  { %643 = vmatpush.msrb.mxu0 %v1199_v0  ;;  %663 = vmatpush.msrb.mxu1 %v1204_v1 }
 0x1ae   :  { %644 = vmatpush.msrb.mxu0 %v1209_v2  ;;  %664 = vmatpush.msrb.mxu1 %v1216_v3 }
 0x1b0   :  { %645 = vmatpush.msrb.mxu0 %v1221_v4  ;;  %665 = vmatpush.msrb.mxu1 %v1226_v5 }
 0x1b2   :  { %646 = vmatpush.msrb.mxu0 %v1239_v8  ;;  %666 = vmatpush.msrb.mxu1 %v1244_v9 }
 0x1b4   :  { %647 = vmatpush.msrb.mxu0 %v1254_v11  ;;  %667 = vmatpush.msrb.mxu1 %v1262_v13 }
 0x1b6   :  { %648 = vmatpush.msrb.mxu0 %v1281_v18  ;;  %668 = vmatpush.msrb.mxu1 %v1286_v19 }
 0x1b8   :  { %649 = vmatpush.msrb.mxu0 %v1299_v22  ;;  %669 = vmatpush.msrb.mxu1 %v1304_v23 }
 0x1ba   :  { %650 = vmatpush.msrb.mxu0 %v1314_v25  ;;  %670 = vmatpush.msrb.mxu1 %v1319_v26 }
 0x228   :  { %v235_v32 = vpop.f32.mrf.mxu0  ;;  %v255_v35 = vpop.f32.mrf.mxu1 }
 0x229   :  { %v260_v36 = vrot.slane %v235_v32, 6  ;;  %v261_v37 = vrot.slane %v255_v35, 6 }
 0x22b   :  { %v264_v38 = vadd.f32 %v260_v36, %v1400_v33  ;;  %v265_v39 = vadd.f32 %v261_v37, %v1404_v34 }
 0x22d   :  { %v1014_v40 = vmul.f32 -1.442695, %v264_v38  ;;  %v1015_v41 = vmul.f32 -1.442695, %v265_v39 }
 0x22f   :  { %1062 = vpow2.f32 %v1014_v40 }
 0x230   :  { %1064 = vpow2.f32 %v1015_v41 }
 0x235   :  { %v1063_v42 = vpop.eup %1062 }
 0x236   :  { %v1065_v43 = vpop.eup %1064  ;;  %v272_v44 = vadd.f32 1.0, %v1063_v42 }
 0x237   :  { %v273_v45 = vadd.f32 1.0, %v1065_v43 }
 0x238   :  { %1066 = vrcp.f32 %v272_v44  ;;  %v285_v51 = vand.u32 2147483648, %v272_v44  ;;  %v283_v54 = vand.u32 2147483647, %v272_v44  ;;  %vm279_vm13 = vweird.f32 %v272_v44 }
 0x239   :  { %1068 = vrcp.f32 %v273_v45  ;;  %v300_v55 = vand.u32 2147483648, %v273_v45  ;;  %v298_v57 = vand.u32 2147483647, %v273_v45  ;;  %vm294_vm15 = vweird.f32 %v273_v45 }
 0x23a   :  { %v286_v59 = vor.u32 1.1754944e-38, %v285_v51  ;;  %vm284_vm0 = vcmp.eq.f32.partialorder %v283_v54, 8.507059e+37 }
 0x23b   :  { %v301_v63 = vor.u32 1.1754944e-38, %v300_v55  ;;  %vm299_vm2 = vcmp.eq.f32.partialorder %v298_v57, 8.507059e+37 }
 0x23e   :  { %v1067_v46 = vpop.eup %1066 }
 0x23f   :  { %v1069_v47 = vpop.eup %1068  ;;  %v275_v48 = vmul.f32 %v1067_v46, %v272_v44  ;;  %vm280_vm11 = vweird.f32 %v1067_v46 }
 0x240   :  { %v290_v49 = vmul.f32 %v1069_v47, %v273_v45  ;;  %vm295_vm12 = vweird.f32 %v1069_v47  ;;  %vm281_vm14 = vmor %vm279_vm13, %vm280_vm11 }
 0x241   :  { %v276_v50 = vsub.f32 1.0, %v275_v48  ;;  %vm296_vm1 = vmor %vm294_vm15, %vm295_vm12 }
 0x242   :  { %v291_v52 = vsub.f32 1.0, %v290_v49 }
 0x243   :  { %v277_v53 = vmul.f32 %v1067_v46, %v276_v50 }
 0x244   :  { %v292_v56 = vmul.f32 %v1069_v47, %v291_v52 }
 0x245   :  { %v278_v58 = vadd.f32 %v1067_v46, %v277_v53 }
 0x246   :  { %v293_v60 = vadd.f32 %v1069_v47, %v292_v56 }
 0x247   :  { %v282_v62 = vsel %vm281_vm14, %v1067_v46, %v278_v58 }
 0x248   :  { %v287_v6 = vsel %vm284_vm0, %v286_v59, %v282_v62  ;;  %v297_v7 = vsel %vm296_vm1, %v1069_v47, %v293_v60 }
 0x249   :  { %v302_v10 = vsel %vm299_vm2, %v301_v63, %v297_v7  ;;  %v309_v12 = vmul.f32 %v307_v61, %v287_v6 }
 0x24a   :  { %v304_v14 = vmul.f32 2.0, %v302_v10 }
 0x24c   :  { %v1016_v15 = vadd.f32 -1.0, %v304_v14 }
 0x24e   :  { %v310_v16 = vmul.f32 %v1016_v15, %v287_v6 }
 0x250   :  { %312 = vrot.lane.b32.xlu1 %v310_v16, %s1159_s3 }
 0x2c2   :  { %v313_v20 = vpop.permute.xlu1 %312 }
 0x2c3   :  { %v1444_v21 = vadd.f32 %v313_v20, %v309_v12 }
 0x2c5   :  { %1070 = vtanh.f32 %v1444_v21  ;;  %v413_v63 = vrot.slane %v1444_v21, 6 }
 0x2cb   :  { %v1071_v17 = vpop.eup %1070 }
 0x2cc   :  { %v317_v24 = vmul.f32 %v1071_v17, %v302_v10 }
 0x2ce   :  { %v319_v32 = vrot.slane %v317_v24, 2 }
 0x2d0   :  { %320 = vrot.lane.b32.xlu1 %v319_v32, %s1159_s3 }
 0x342   :  { %v321_v35 = vpop.permute.xlu1 %320 }
 0x343   :  { %1017 = vmatmul.msk.f32.vlgmr.msrb.gmra.mxu2 %vm118_vm10, %v321_v35  ;;  %1018 = vmatmul.msk.f32.vlgmr.msrb.gmra.mxu3 %vm118_vm10, %v321_v35 }
 0x344   :  { %749 = vmatpush.msrb.mxu2 %v1199_v0  ;;  %769 = vmatpush.msrb.mxu3 %v1204_v1 }
 0x346   :  { %750 = vmatpush.msrb.mxu2 %v1209_v2  ;;  %770 = vmatpush.msrb.mxu3 %v1216_v3 }
 0x348   :  { %751 = vmatpush.msrb.mxu2 %v1221_v4  ;;  %771 = vmatpush.msrb.mxu3 %v1226_v5 }
 0x34a   :  { %752 = vmatpush.msrb.mxu2 %v1239_v8  ;;  %772 = vmatpush.msrb.mxu3 %v1244_v9 }
 0x34c   :  { %753 = vmatpush.msrb.mxu2 %v1254_v11  ;;  %773 = vmatpush.msrb.mxu3 %v1262_v13 }
 0x34e   :  { %754 = vmatpush.msrb.mxu2 %v1281_v18  ;;  %774 = vmatpush.msrb.mxu3 %v1286_v19 }
 0x350   :  { %755 = vmatpush.msrb.mxu2 %v1299_v22  ;;  %775 = vmatpush.msrb.mxu3 %v1304_v23 }
 0x352   :  { %756 = vmatpush.msrb.mxu2 %v1314_v25  ;;  %776 = vmatpush.msrb.mxu3 %v1319_v26 }
 0x3c6   :  { %v341_v36 = vpop.f32.mrf.mxu2  ;;  %v361_v37 = vpop.f32.mrf.mxu3 }
 0x3c7   :  { %v366_v38 = vrot.slane %v341_v36, 4  ;;  %v367_v39 = vrot.slane %v361_v37, 4 }
 0x3c9   :  { %v370_v40 = vadd.f32 %v366_v38, %v1400_v33  ;;  %v371_v41 = vadd.f32 %v367_v39, %v1404_v34 }
 0x3cb   :  { %v1019_v42 = vmul.f32 -1.442695, %v370_v40  ;;  %v1020_v43 = vmul.f32 -1.442695, %v371_v41 }
 0x3cd   :  { %1072 = vpow2.f32 %v1019_v42 }
 0x3ce   :  { %1074 = vpow2.f32 %v1020_v43 }
 0x3d3   :  { %v1073_v44 = vpop.eup %1072 }
 0x3d4   :  { %v1075_v45 = vpop.eup %1074  ;;  %v378_v46 = vadd.f32 1.0, %v1073_v44 }
 0x3d5   :  { %v379_v47 = vadd.f32 1.0, %v1075_v45 }
 0x3d6   :  { %1076 = vrcp.f32 %v378_v46  ;;  %v391_v53 = vand.u32 2147483648, %v378_v46  ;;  %v389_v56 = vand.u32 2147483647, %v378_v46  ;;  %vm385_vm5 = vweird.f32 %v378_v46 }
 0x3d7   :  { %1078 = vrcp.f32 %v379_v47  ;;  %v406_v57 = vand.u32 2147483648, %v379_v47  ;;  %v404_v59 = vand.u32 2147483647, %v379_v47  ;;  %vm400_vm7 = vweird.f32 %v379_v47 }
 0x3d8   :  { %v392_v61 = vor.u32 1.1754944e-38, %v391_v53  ;;  %vm390_vm8 = vcmp.eq.f32.partialorder %v389_v56, 8.507059e+37 }
 0x3d9   :  { %v407_v7 = vor.u32 1.1754944e-38, %v406_v57  ;;  %vm405_vm11 = vcmp.eq.f32.partialorder %v404_v59, 8.507059e+37 }
 0x3dc   :  { %v1077_v48 = vpop.eup %1076 }
 0x3dd   :  { %v1079_v49 = vpop.eup %1078  ;;  %v381_v50 = vmul.f32 %v1077_v48, %v378_v46  ;;  %vm386_vm3 = vweird.f32 %v1077_v48 }
 0x3de   :  { %v396_v51 = vmul.f32 %v1079_v49, %v379_v47  ;;  %vm401_vm4 = vweird.f32 %v1079_v49  ;;  %vm387_vm6 = vmor %vm385_vm5, %vm386_vm3 }
 0x3df   :  { %v382_v52 = vsub.f32 1.0, %v381_v50  ;;  %vm402_vm9 = vmor %vm400_vm7, %vm401_vm4 }
 0x3e0   :  { %v397_v54 = vsub.f32 1.0, %v396_v51 }
 0x3e1   :  { %v383_v55 = vmul.f32 %v1077_v48, %v382_v52 }
 0x3e2   :  { %v398_v58 = vmul.f32 %v1079_v49, %v397_v54 }
 0x3e3   :  { %v384_v60 = vadd.f32 %v1077_v48, %v383_v55 }
 0x3e4   :  { %v399_v62 = vadd.f32 %v1079_v49, %v398_v58 }
 0x3e5   :  { %v388_v6 = vsel %vm387_vm6, %v1077_v48, %v384_v60 }
 0x3e6   :  { %v393_v10 = vsel %vm390_vm8, %v392_v61, %v388_v6  ;;  %v403_v12 = vsel %vm402_vm9, %v1079_v49, %v399_v62  ;;  %v1507_v6 = vadd.f32 %v1438_v31, %v39_v30 }
 0x3e7   :  { %v408_v14 = vsel %vm405_vm11, %v407_v7, %v403_v12  ;;  %v415_v15 = vmul.f32 %v413_v63, %v393_v10  ;;  %v1502_v63 = vadd.f32 %v1436_v27, %v38_v29 }
 0x3e8   :  { %v410_v16 = vmul.f32 2.0, %v408_v14 }
 0x3ea   :  { %v1021_v20 = vadd.f32 -1.0, %v410_v16 }
 0x3ec   :  { %v416_v17 = vmul.f32 %v1021_v20, %v393_v10 }
 0x3ee   :  { %418 = vrot.lane.b32.xlu2 %v416_v17, %s1159_s3 }
 0x448   :  { %v419_v24 = vpop.permute.xlu2 %418 }
 0x449   :  { %v1470_v32 = vadd.f32 %v419_v24, %v415_v15 }
 0x44b   :  { %1080 = vtanh.f32 %v1470_v32  ;;  %v519_v47 = vrot.slane %v1470_v32, 6 }
 0x451   :  { %v1081_v21 = vpop.eup %1080 }
 0x452   :  { %v423_v35 = vmul.f32 %v1081_v21, %v408_v14 }
 0x454   :  { %v425_v36 = vrot.slane %v423_v35, 4 }
 0x456   :  { %426 = vrot.lane.b32.xlu2 %v425_v36, %s1159_s3 }
 0x4b0   :  { %v427_v37 = vpop.permute.xlu2 %426 }
 0x4b1   :  { %1022 = vmatmul.msk.f32.vlgmr.msra.gmra.mxu0 %vm118_vm10, %v427_v37  ;;  %1023 = vmatmul.msk.f32.vlgmr.msra.gmra.mxu1 %vm118_vm10, %v427_v37 }
 0x4b2   :  { %855 = vmatpush.msra.mxu0 %v1199_v0  ;;  %875 = vmatpush.msra.mxu1 %v1204_v1 }
 0x4b4   :  { %856 = vmatpush.msra.mxu0 %v1209_v2  ;;  %876 = vmatpush.msra.mxu1 %v1216_v3 }
 0x4b6   :  { %857 = vmatpush.msra.mxu0 %v1221_v4  ;;  %877 = vmatpush.msra.mxu1 %v1226_v5 }
 0x4b8   :  { %858 = vmatpush.msra.mxu0 %v1239_v8  ;;  %878 = vmatpush.msra.mxu1 %v1244_v9 }
 0x4ba   :  { %859 = vmatpush.msra.mxu0 %v1254_v11  ;;  %879 = vmatpush.msra.mxu1 %v1262_v13 }
 0x4bc   :  { %860 = vmatpush.msra.mxu0 %v1281_v18  ;;  %880 = vmatpush.msra.mxu1 %v1286_v19 }
 0x4be   :  { %861 = vmatpush.msra.mxu0 %v1299_v22  ;;  %881 = vmatpush.msra.mxu1 %v1304_v23 }
 0x4c0   :  { %862 = vmatpush.msra.mxu0 %v1314_v25  ;;  %882 = vmatpush.msra.mxu1 %v1319_v26 }
 0x52e   :  { %v447_v0 = vpop.f32.mrf.mxu0  ;;  %v467_v1 = vpop.f32.mrf.mxu1 }
 0x52f   :  { %v472_v2 = vrot.slane %v447_v0, 2  ;;  %v473_v3 = vrot.slane %v467_v1, 2 }
 0x531   :  { %v476_v4 = vadd.f32 %v472_v2, %v1400_v33  ;;  %v477_v5 = vadd.f32 %v473_v3, %v1404_v34 }
 0x533   :  { %v1024_v8 = vmul.f32 -1.442695, %v476_v4  ;;  %v1025_v9 = vmul.f32 -1.442695, %v477_v5 }
 0x535   :  { %1082 = vpow2.f32 %v1024_v8 }
 0x536   :  { %1084 = vpow2.f32 %v1025_v9 }
 0x53b   :  { %v1083_v11 = vpop.eup %1082 }
 0x53c   :  { %v1085_v13 = vpop.eup %1084  ;;  %v484_v18 = vadd.f32 1.0, %v1083_v11 }
 0x53d   :  { %v485_v19 = vadd.f32 1.0, %v1085_v13 }
 0x53e   :  { %1086 = vrcp.f32 %v484_v18  ;;  %v497_v39 = vand.u32 2147483648, %v484_v18  ;;  %v495_v34 = vand.u32 2147483647, %v484_v18  ;;  %vm491_vm14 = vweird.f32 %v484_v18 }
 0x53f   :  { %1088 = vrcp.f32 %v485_v19  ;;  %v512_v41 = vand.u32 2147483648, %v485_v19  ;;  %v510_v43 = vand.u32 2147483647, %v485_v19  ;;  %vm506_vm0 = vweird.f32 %v485_v19 }
 0x540   :  { %v498_v45 = vor.u32 1.1754944e-38, %v497_v39  ;;  %vm496_vm1 = vcmp.eq.f32.partialorder %v495_v34, 8.507059e+37 }
 0x541   :  { %v513_v49 = vor.u32 1.1754944e-38, %v512_v41  ;;  %vm511_vm3 = vcmp.eq.f32.partialorder %v510_v43, 8.507059e+37 }
 0x544   :  { %v1087_v22 = vpop.eup %1086 }
 0x545   :  { %v1089_v23 = vpop.eup %1088  ;;  %v487_v25 = vmul.f32 %v1087_v22, %v484_v18  ;;  %vm492_vm12 = vweird.f32 %v1087_v22 }
 0x546   :  { %v502_v26 = vmul.f32 %v1089_v23, %v485_v19  ;;  %vm507_vm13 = vweird.f32 %v1089_v23  ;;  %vm493_vm15 = vmor %vm491_vm14, %vm492_vm12 }
 0x547   :  { %v488_v38 = vsub.f32 1.0, %v487_v25  ;;  %vm508_vm2 = vmor %vm506_vm0, %vm507_vm13 }
 0x548   :  { %v503_v40 = vsub.f32 1.0, %v502_v26 }
 0x549   :  { %v489_v33 = vmul.f32 %v1087_v22, %v488_v38 }
 0x54a   :  { %v504_v42 = vmul.f32 %v1089_v23, %v503_v40 }
 0x54b   :  { %v490_v44 = vadd.f32 %v1087_v22, %v489_v33 }
 0x54c   :  { %v505_v46 = vadd.f32 %v1089_v23, %v504_v42 }
 0x54d   :  { %v494_v48 = vsel %vm493_vm15, %v1087_v22, %v490_v44 }
 0x54e   :  { %v499_v50 = vsel %vm496_vm1, %v498_v45, %v494_v48  ;;  %v509_v51 = vsel %vm508_vm2, %v1089_v23, %v505_v46 }
 0x54f   :  { %v514_v52 = vsel %vm511_vm3, %v513_v49, %v509_v51  ;;  %v521_v53 = vmul.f32 %v519_v47, %v499_v50 }
 0x550   :  { %v516_v54 = vmul.f32 2.0, %v514_v52 }
 0x552   :  { %v1026_v55 = vadd.f32 -1.0, %v516_v54 }
 0x554   :  { %v522_v56 = vmul.f32 %v1026_v55, %v499_v50 }
 0x556   :  { %524 = vrot.lane.b32.xlu0 %v522_v56, %s1159_s3 }
 0x5c8   :  { %v525_v57 = vpop.permute.xlu0 %524 }
 0x5c9   :  { %v527_v58 = vadd.f32 %v525_v57, %v521_v53 }
 0x5cb   :  { %1090 = vtanh.f32 %v527_v58  ;;  %v619_v8 = vrot.slane %v527_v58, 6 }
 0x5d1   :  { %v1091_v59 = vpop.eup %1090 }
 0x5d2   :  { %v529_v60 = vmul.f32 %v1091_v59, %v514_v52 }
 0x5d4   :  { %v531_v61 = vrot.slane %v529_v60, 6 }
 0x5d6   :  { %532 = vrot.lane.b32.xlu1 %v531_v61, %s1159_s3 }
 0x648   :  { %v533_v62 = vpop.permute.xlu1 %532 }
 0x649   :  { %1027 = vmatmul.msk.f32.vlgmr.msra.gmra.mxu2 %vm118_vm10, %v533_v62  ;;  %1028 = vmatmul.msk.f32.vlgmr.msra.gmra.mxu3 %vm118_vm10, %v533_v62 }
 0x6cc   :  { %v553_v7 = vpop.f32.mrf.mxu2  ;;  %v573_v10 = vpop.f32.mrf.mxu3 }
 0x6cd   :  { %v576_v12 = vadd.f32 %v553_v7, %v1502_v63  ;;  %v577_v14 = vadd.f32 %v573_v10, %v1507_v6 }
 0x6cf   :  { %v1029_v15 = vmul.f32 -1.442695, %v576_v12  ;;  %v1030_v16 = vmul.f32 -1.442695, %v577_v14 }
 0x6d1   :  { %1092 = vpow2.f32 %v1029_v15 }
 0x6d2   :  { %1094 = vpow2.f32 %v1030_v16 }
 0x6d7   :  { %v1093_v20 = vpop.eup %1092 }
 0x6d8   :  { %v1095_v17 = vpop.eup %1094  ;;  %v584_v24 = vadd.f32 1.0, %v1093_v20 }
 0x6d9   :  { %v585_v29 = vadd.f32 1.0, %v1095_v17 }
 0x6da   :  { %1096 = vrcp.f32 %v584_v24  ;;  %v597_v35 = vand.u32 2147483648, %v584_v24  ;;  %v595_v37 = vand.u32 2147483647, %v584_v24  ;;  %vm591_vm6 = vweird.f32 %v584_v24 }
 0x6db   :  { %1098 = vrcp.f32 %v585_v29  ;;  %v612_v0 = vand.u32 2147483648, %v585_v29  ;;  %v610_v2 = vand.u32 2147483647, %v585_v29  ;;  %vm606_vm8 = vweird.f32 %v585_v29 }
 0x6dc   :  { %v598_v4 = vor.u32 1.1754944e-38, %v597_v35  ;;  %vm596_vm9 = vcmp.eq.f32.partialorder %v595_v37, 8.507059e+37 }
 0x6dd   :  { %v613_v11 = vor.u32 1.1754944e-38, %v612_v0  ;;  %vm611_vm12 = vcmp.eq.f32.partialorder %v610_v2, 8.507059e+37 }
 0x6e0   :  { %v1097_v28 = vpop.eup %1096 }
 0x6e1   :  { %v1099_v27 = vpop.eup %1098  ;;  %v587_v30 = vmul.f32 %v1097_v28, %v584_v24  ;;  %vm592_vm4 = vweird.f32 %v1097_v28 }
 0x6e2   :  { %v602_v31 = vmul.f32 %v1099_v27, %v585_v29  ;;  %vm607_vm5 = vweird.f32 %v1099_v27  ;;  %vm593_vm7 = vmor %vm591_vm6, %vm592_vm4 }
 0x6e3   :  { %v588_v32 = vsub.f32 1.0, %v587_v30  ;;  %vm608_vm11 = vmor %vm606_vm8, %vm607_vm5 }
 0x6e4   :  { %v603_v21 = vsub.f32 1.0, %v602_v31 }
 0x6e5   :  { %v589_v36 = vmul.f32 %v1097_v28, %v588_v32 }
 0x6e6   :  { %v604_v1 = vmul.f32 %v1099_v27, %v603_v21 }
 0x6e7   :  { %v590_v3 = vadd.f32 %v1097_v28, %v589_v36 }
 0x6e8   :  { %v605_v5 = vadd.f32 %v1099_v27, %v604_v1 }
 0x6e9   :  { %v594_v9 = vsel %vm593_vm7, %v1097_v28, %v590_v3 }
 0x6ea   :  { %v599_v13 = vsel %vm596_vm9, %v598_v4, %v594_v9  ;;  %v609_v18 = vsel %vm608_vm11, %v1099_v27, %v605_v5 }
 0x6eb   :  { %v614_v19 = vsel %vm611_vm12, %v613_v11, %v609_v18  ;;  %v621_v22 = vmul.f32 %v619_v8, %v599_v13 }
 0x6ec   :  { %v616_v23 = vmul.f32 2.0, %v614_v19 }
 0x6ee   :  { %v1031_v25 = vadd.f32 -1.0, %v616_v23 }
 0x6f0   :  { %v622_v26 = vmul.f32 %v1031_v25, %v599_v13 }
 0x6f2   :  { %624 = vrot.lane.b32.xlu2 %v622_v26, %s1159_s3 }
 0x74c   :  { %v625_v38 = vpop.permute.xlu2 %624 }
 0x74d   :  { %v627_v39 = vadd.f32 %v625_v38, %v621_v22 }
 0x74f   :  { %1100 = vtanh.f32 %v627_v39  ;;  %v724_v16 = vrot.slane %v627_v39, 6 }
 0x755   :  { %v1101_v40 = vpop.eup %1100 }
 0x756   :  { %v629_v33 = vmul.f32 %v1101_v40, %v614_v19 }
 0x758   :  { %631 = vrot.lane.b32.xlu0 %v629_v33, %s1159_s3 }
 0x7ca   :  { %v632_v34 = vpop.permute.xlu0 %631 }
 0x7cb   :  { %1032 = vmatmul.msk.f32.vlgmr.msrb.gmra.mxu0 %vm118_vm10, %v632_v34  ;;  %1033 = vmatmul.msk.f32.vlgmr.msrb.gmra.mxu1 %vm118_vm10, %v632_v34 }
 0x848   :  { %v652_v41 = vpop.f32.mrf.mxu0  ;;  %v672_v42 = vpop.f32.mrf.mxu1 }
 0x849   :  { %v677_v43 = vrot.slane %v652_v41, 6  ;;  %v678_v44 = vrot.slane %v672_v42, 6 }
 0x84b   :  { %v681_v45 = vadd.f32 %v677_v43, %v1502_v63  ;;  %v682_v46 = vadd.f32 %v678_v44, %v1507_v6 }
 0x84d   :  { %v1034_v47 = vmul.f32 -1.442695, %v681_v45  ;;  %v1035_v48 = vmul.f32 -1.442695, %v682_v46 }
 0x84f   :  { %1102 = vpow2.f32 %v1034_v47 }
 0x850   :  { %1104 = vpow2.f32 %v1035_v48 }
 0x855   :  { %v1103_v49 = vpop.eup %1102 }
 0x856   :  { %v1105_v50 = vpop.eup %1104  ;;  %v689_v51 = vadd.f32 1.0, %v1103_v49 }
 0x857   :  { %v690_v52 = vadd.f32 1.0, %v1105_v50 }
 0x858   :  { %1106 = vrcp.f32 %v689_v51  ;;  %v702_v58 = vand.u32 2147483648, %v689_v51  ;;  %v700_v61 = vand.u32 2147483647, %v689_v51  ;;  %vm696_vm15 = vweird.f32 %v689_v51 }
 0x859   :  { %1108 = vrcp.f32 %v690_v52  ;;  %v717_v62 = vand.u32 2147483648, %v690_v52  ;;  %v715_v10 = vand.u32 2147483647, %v690_v52  ;;  %vm711_vm1 = vweird.f32 %v690_v52 }
 0x85a   :  { %v703_v14 = vor.u32 1.1754944e-38, %v702_v58  ;;  %vm701_vm2 = vcmp.eq.f32.partialorder %v700_v61, 8.507059e+37 }
 0x85b   :  { %v718_v17 = vor.u32 1.1754944e-38, %v717_v62  ;;  %vm716_vm4 = vcmp.eq.f32.partialorder %v715_v10, 8.507059e+37 }
 0x85e   :  { %v1107_v53 = vpop.eup %1106 }
 0x85f   :  { %v1109_v54 = vpop.eup %1108  ;;  %v692_v55 = vmul.f32 %v1107_v53, %v689_v51  ;;  %vm697_vm13 = vweird.f32 %v1107_v53 }
 0x860   :  { %v707_v56 = vmul.f32 %v1109_v54, %v690_v52  ;;  %vm712_vm14 = vweird.f32 %v1109_v54  ;;  %vm698_vm0 = vmor %vm696_vm15, %vm697_vm13 }
 0x861   :  { %v693_v57 = vsub.f32 1.0, %v692_v55  ;;  %vm713_vm3 = vmor %vm711_vm1, %vm712_vm14 }
 0x862   :  { %v708_v59 = vsub.f32 1.0, %v707_v56 }
 0x863   :  { %v694_v60 = vmul.f32 %v1107_v53, %v693_v57 }
 0x864   :  { %v709_v7 = vmul.f32 %v1109_v54, %v708_v59 }
 0x865   :  { %v695_v12 = vadd.f32 %v1107_v53, %v694_v60 }
 0x866   :  { %v710_v15 = vadd.f32 %v1109_v54, %v709_v7 }
 0x867   :  { %v699_v20 = vsel %vm698_vm0, %v1107_v53, %v695_v12 }
 0x868   :  { %v704_v24 = vsel %vm701_vm2, %v703_v14, %v699_v20  ;;  %v714_v29 = vsel %vm713_vm3, %v1109_v54, %v710_v15 }
 0x869   :  { %v719_v28 = vsel %vm716_vm4, %v718_v17, %v714_v29  ;;  %v726_v27 = vmul.f32 %v724_v16, %v704_v24 }
 0x86a   :  { %v721_v30 = vmul.f32 2.0, %v719_v28 }
 0x86c   :  { %v1036_v31 = vadd.f32 -1.0, %v721_v30 }
 0x86e   :  { %v727_v32 = vmul.f32 %v1036_v31, %v704_v24 }
 0x870   :  { %729 = vrot.lane.b32.xlu1 %v727_v32, %s1159_s3 }
 0x8e2   :  { %v730_v21 = vpop.permute.xlu1 %729 }
 0x8e3   :  { %v732_v35 = vadd.f32 %v730_v21, %v726_v27 }
 0x8e5   :  { %1110 = vtanh.f32 %v732_v35  ;;  %v830_v49 = vrot.slane %v732_v35, 6 }
 0x8eb   :  { %v1111_v36 = vpop.eup %1110 }
 0x8ec   :  { %v734_v37 = vmul.f32 %v1111_v36, %v719_v28 }
 0x8ee   :  { %v736_v0 = vrot.slane %v734_v37, 2 }
 0x8f0   :  { %737 = vrot.lane.b32.xlu2 %v736_v0, %s1159_s3 }
 0x94a   :  { %v738_v1 = vpop.permute.xlu2 %737 }
 0x94b   :  { %1037 = vmatmul.msk.f32.vlgmr.msrb.gmra.mxu2 %vm118_vm10, %v738_v1  ;;  %1038 = vmatmul.msk.f32.vlgmr.msrb.gmra.mxu3 %vm118_vm10, %v738_v1 }
 0x9ce   :  { %v758_v2 = vpop.f32.mrf.mxu2  ;;  %v778_v3 = vpop.f32.mrf.mxu3 }
 0x9cf   :  { %v783_v4 = vrot.slane %v758_v2, 4  ;;  %v784_v5 = vrot.slane %v778_v3, 4 }
 0x9d1   :  { %v787_v8 = vadd.f32 %v783_v4, %v1502_v63  ;;  %v788_v9 = vadd.f32 %v784_v5, %v1507_v6 }
 0x9d3   :  { %v1039_v11 = vmul.f32 -1.442695, %v787_v8  ;;  %v1040_v13 = vmul.f32 -1.442695, %v788_v9 }
 0x9d5   :  { %1112 = vpow2.f32 %v1039_v11 }
 0x9d6   :  { %1114 = vpow2.f32 %v1040_v13 }
 0x9db   :  { %v1113_v18 = vpop.eup %1112 }
 0x9dc   :  { %v1115_v19 = vpop.eup %1114  ;;  %v795_v22 = vadd.f32 1.0, %v1113_v18 }
 0x9dd   :  { %v796_v23 = vadd.f32 1.0, %v1115_v19 }
 0x9de   :  { %1116 = vrcp.f32 %v795_v22  ;;  %v808_v34 = vand.u32 2147483648, %v795_v22  ;;  %v806_v42 = vand.u32 2147483647, %v795_v22  ;;  %vm802_vm7 = vweird.f32 %v795_v22 }
 0x9df   :  { %1118 = vrcp.f32 %v796_v23  ;;  %v823_v43 = vand.u32 2147483648, %v796_v23  ;;  %v821_v45 = vand.u32 2147483647, %v796_v23  ;;  %vm817_vm9 = vweird.f32 %v796_v23 }
 0x9e0   :  { %v809_v47 = vor.u32 1.1754944e-38, %v808_v34  ;;  %vm807_vm11 = vcmp.eq.f32.partialorder %v806_v42, 8.507059e+37  ;;  %v952_v34 = vld [vmem:[%s1566_s4 + $0x28] sm:$0xff]  ;;  %v950_v42 = vld [vmem:[%s1566_s4 + $0x18] sm:$0xff] }
 0x9e1   :  { %v824_v51 = vor.u32 1.1754944e-38, %v823_v43  ;;  %vm822_vm13 = vcmp.eq.f32.partialorder %v821_v45, 8.507059e+37  ;;  %v949_v43 = vld [vmem:[%s1566_s4 + $0x10] sm:$0xff]  ;;  %v947_v45 = vld [vmem:[%s1566_s4] sm:$0xff] }
 0x9e4   :  { %v1117_v25 = vpop.eup %1116 }
 0x9e5   :  { %v1119_v26 = vpop.eup %1118  ;;  %v798_v38 = vmul.f32 %v1117_v25, %v795_v22  ;;  %vm803_vm5 = vweird.f32 %v1117_v25 }
 0x9e6   :  { %v813_v39 = vmul.f32 %v1119_v26, %v796_v23  ;;  %vm818_vm6 = vweird.f32 %v1119_v26  ;;  %vm804_vm8 = vmor %vm802_vm7, %vm803_vm5 }
 0x9e7   :  { %v799_v40 = vsub.f32 1.0, %v798_v38  ;;  %vm819_vm12 = vmor %vm817_vm9, %vm818_vm6  ;;  %vm985_vm6 = vcmask 9216  }
 0x9e8   :  { %v814_v33 = vsub.f32 1.0, %v813_v39 }
 0x9e9   :  { %v800_v41 = vmul.f32 %v1117_v25, %v799_v40  ;;  %v954_v40 = vld [vmem:[%s1566_s4 + $0x38] sm:$0xff] }
 0x9ea   :  { %v815_v44 = vmul.f32 %v1119_v26, %v814_v33  ;;  %v953_v33 = vld [vmem:[%s1566_s4 + $0x30] sm:$0xff]  ;;  %973 = vmatpush.msra.mxu2 %v954_v40 }
 0x9eb   :  { %v801_v46 = vadd.f32 %v1117_v25, %v800_v41  ;;  %v951_v41 = vld [vmem:[%s1566_s4 + $0x20] sm:$0xff] }
 0x9ec   :  { %v816_v48 = vadd.f32 %v1119_v26, %v815_v44  ;;  %974 = vmatpush.msra.mxu2 %v953_v33  ;;  %v948_v44 = vld [vmem:[%s1566_s4 + $0x8] sm:$0xff] }
 0x9ed   :  { %v805_v50 = vsel %vm804_vm8, %v1117_v25, %v801_v46 }
 0x9ee   :  { %v810_v52 = vsel %vm807_vm11, %v809_v47, %v805_v50  ;;  %v820_v53 = vsel %vm819_vm12, %v1119_v26, %v816_v48  ;;  %975 = vmatpush.msra.mxu2 %v952_v34 }
 0x9ef   :  { %v825_v54 = vsel %vm822_vm13, %v824_v51, %v820_v53  ;;  %v832_v55 = vmul.f32 %v830_v49, %v810_v52 }
 0x9f0   :  { %v827_v56 = vmul.f32 2.0, %v825_v54  ;;  %976 = vmatpush.msra.mxu2 %v951_v41 }
 0x9f2   :  { %v1041_v57 = vadd.f32 -1.0, %v827_v56  ;;  %977 = vmatpush.msra.mxu2 %v950_v42 }
 0x9f4   :  { %v833_v58 = vmul.f32 %v1041_v57, %v810_v52  ;;  %978 = vmatpush.msra.mxu2 %v949_v43  ;;  %v1051_v52 = vld [vmem:[%s1567_s5] ss:$0 sm:$0xff] }
 0x9f6   :  { %835 = vrot.lane.b32.xlu0 %v833_v58, %s1159_s3  ;;  %979 = vmatpush.msra.mxu2 %v948_v44 }
 0x9f8   :  { %980 = vmatpush.msra.mxu2 %v947_v45 }
 0xa68   :  { %v836_v59 = vpop.permute.xlu0 %835 }
 0xa69   :  { %v838_v60 = vadd.f32 %v836_v59, %v832_v55 }
 0xa6b   :  { %1120 = vtanh.f32 %v838_v60  ;;  %v936_v11 = vrot.slane %v838_v60, 6 }
 0xa71   :  { %v1121_v61 = vpop.eup %1120 }
 0xa72   :  { %v840_v62 = vmul.f32 %v1121_v61, %v825_v54 }
 0xa74   :  { %v842_v7 = vrot.slane %v840_v62, 4 }
 0xa76   :  { %843 = vrot.lane.b32.xlu1 %v842_v7, %s1159_s3 }
 0xae8   :  { %v844_v10 = vpop.permute.xlu1 %843 }
 0xae9   :  { %1042 = vmatmul.msk.f32.vlgmr.msra.gmra.mxu0 %vm118_vm10, %v844_v10  ;;  %1043 = vmatmul.msk.f32.vlgmr.msra.gmra.mxu1 %vm118_vm10, %v844_v10 }
 0xb66   :  { %v864_v12 = vpop.f32.mrf.mxu0  ;;  %v884_v14 = vpop.f32.mrf.mxu1 }
 0xb67   :  { %v889_v15 = vrot.slane %v864_v12, 2  ;;  %v890_v16 = vrot.slane %v884_v14, 2 }
 0xb69   :  { %v893_v20 = vadd.f32 %v889_v15, %v1502_v63  ;;  %v894_v17 = vadd.f32 %v890_v16, %v1507_v6 }
 0xb6b   :  { %v1044_v24 = vmul.f32 -1.442695, %v893_v20  ;;  %v1045_v29 = vmul.f32 -1.442695, %v894_v17 }
 0xb6d   :  { %1122 = vpow2.f32 %v1044_v24 }
 0xb6e   :  { %1124 = vpow2.f32 %v1045_v29 }
 0xb73   :  { %v1123_v28 = vpop.eup %1122 }
 0xb74   :  { %v1125_v27 = vpop.eup %1124  ;;  %v901_v30 = vadd.f32 1.0, %v1123_v28 }
 0xb75   :  { %v902_v31 = vadd.f32 1.0, %v1125_v27 }
 0xb76   :  { %1126 = vrcp.f32 %v901_v30  ;;  %v914_v1 = vand.u32 2147483648, %v901_v30  ;;  %v912_v6 = vand.u32 2147483647, %v901_v30  ;;  %vm908_vm0 = vweird.f32 %v901_v30 }
 0xb77   :  { %1128 = vrcp.f32 %v902_v31  ;;  %v929_v2 = vand.u32 2147483648, %v902_v31  ;;  %v927_v4 = vand.u32 2147483647, %v902_v31  ;;  %vm923_vm2 = vweird.f32 %v902_v31 }
 0xb78   :  { %v915_v8 = vor.u32 1.1754944e-38, %v914_v1  ;;  %vm913_vm3 = vcmp.eq.f32.partialorder %v912_v6, 8.507059e+37 }
 0xb79   :  { %v930_v18 = vor.u32 1.1754944e-38, %v929_v2  ;;  %vm928_vm5 = vcmp.eq.f32.partialorder %v927_v4, 8.507059e+37 }
 0xb7c   :  { %v1127_v32 = vpop.eup %1126 }
 0xb7d   :  { %v1129_v21 = vpop.eup %1128  ;;  %v904_v35 = vmul.f32 %v1127_v32, %v901_v30  ;;  %vm909_vm14 = vweird.f32 %v1127_v32 }
 0xb7e   :  { %v919_v36 = vmul.f32 %v1129_v21, %v902_v31  ;;  %vm924_vm15 = vweird.f32 %v1129_v21  ;;  %vm910_vm1 = vmor %vm908_vm0, %vm909_vm14 }
 0xb7f   :  { %v905_v37 = vsub.f32 1.0, %v904_v35  ;;  %vm925_vm4 = vmor %vm923_vm2, %vm924_vm15 }
 0xb80   :  { %v920_v0 = vsub.f32 1.0, %v919_v36 }
 0xb81   :  { %v906_v63 = vmul.f32 %v1127_v32, %v905_v37 }
 0xb82   :  { %v921_v3 = vmul.f32 %v1129_v21, %v920_v0 }
 0xb83   :  { %v907_v5 = vadd.f32 %v1127_v32, %v906_v63 }
 0xb84   :  { %v922_v9 = vadd.f32 %v1129_v21, %v921_v3 }
 0xb85   :  { %v911_v13 = vsel %vm910_vm1, %v1127_v32, %v907_v5 }
 0xb86   :  { %v916_v19 = vsel %vm913_vm3, %v915_v8, %v911_v13  ;;  %v926_v22 = vsel %vm925_vm4, %v1129_v21, %v922_v9 }
 0xb87   :  { %v931_v23 = vsel %vm928_vm5, %v930_v18, %v926_v22  ;;  %v938_v25 = vmul.f32 %v936_v11, %v916_v19 }
 0xb88   :  { %v933_v26 = vmul.f32 2.0, %v931_v23 }
 0xb8a   :  { %v1046_v38 = vadd.f32 -1.0, %v933_v26 }
 0xb8c   :  { %v939_v39 = vmul.f32 %v1046_v38, %v916_v19 }
 0xb8e   :  { %941 = vrot.lane.b32.xlu2 %v939_v39, %s1159_s3 }
 0xbe8   :  { %v942_v46 = vpop.permute.xlu2 %941 }
 0xbe9   :  { %v944_v47 = vadd.f32 %v942_v46, %v938_v25 }
 0xbeb   :  { %1130 = vtanh.f32 %v944_v47 }
 0xbf1   :  { %v1131_v48 = vpop.eup %1130 }
 0xbf2   :  { %v946_v49 = vmul.f32 %v1131_v48, %v931_v23 }
 0xbf4   :  { %v960_v50 = vrot.slane %v946_v49, 6 }
 0xbf6   :  { %961 = vrot.lane.b32.xlu0 %v960_v50, %s1159_s3 }
 0xc68   :  { %v962_v51 = vpop.permute.xlu0 %961 }
 0xc69   :  { %1047 = vmatmul.msk.f32.vlgmr.msra.gmra.mxu2 %vm118_vm10, %v962_v51 }
 0xcec   :  { %v982_v53 = vpop.f32.mrf.mxu2 }
 0xced   :  { %v983_v54 = vadd.f32 %v1051_v52, %v982_v53 }
 0xcef   :  { %986 = vst.msk [vmem:[#allocation2] sm:$0x3] %vm985_vm6, %v983_v54 }
 0xcf0   :  { %997 = dma.vmem_to_hbm [thread:$0]  %s993_s1, 32, %s995_s24, [#allocation3]  }
 0xcf1   :  { %1156 = dma.done.wait [#allocation3], 32  }
 0xcf2   :  { %1157 = vsyncadd [#allocation3], 4294967264 }
 0xcf3   :  { %1002 = vsyncpa [#allocation3], 1 }

</bundles_post_ra>
